<compile_context>
chip_gen: v7x
topology: tpu7x:2x2x1
jax: 0.10.0
libtpu: 0.0.40
codegen_flags: <defaults>
</compile_context>

<pallas_src>
import functools

import numpy as np

import jax
import jax.numpy as jnp
from jax.experimental import pallas as pl
from jax.experimental.pallas import tpu as pltpu


_VMEM_LIMIT = 32 * 1024 * 1024  # safe on every TPU generation (v7x has 64 MiB)


# ----------------------------------------------------------------------------
# Kernels
# ----------------------------------------------------------------------------

def _fhn_flow_kernel(x_ref, o_ref, *, a, b, c, dim):
    """Flow field for a (dim, st, 128) packed state tile. Pure VPU, one store."""
    inv_c = 1.0 / c
    third = 1.0 / 3.0

    v = x_ref[0].astype(jnp.float32)          # (st, 128) dense vregs
    w = x_ref[1].astype(jnp.float32)

    dv = c * (v - (v * v * v) * third - w)
    dw = -(v - a + b * w) * inv_c

    parts = [dv[None], dw[None]]
    if dim > 2:
        # Remaining state coordinates have zero flow (matches torch.zeros_like).
        parts.append(jnp.zeros((dim - 2,) + dv.shape, jnp.float32))
    o_ref[...] = jnp.concatenate(parts, axis=0).astype(o_ref.dtype)


def _fhn_rollout_kernel(x0_ref, traj_ref, state_ref, *, a, b, c, dt, dim, tchunk):
    """Fused RK4 rollout: TCHUNK record-then-step iterations per grid step.

    grid = (batch_tiles, n_chunks); time is innermost ("arbitrary") so the
    f32 VMEM scratch `state_ref` carries the state across chunks.  Matches
    odeint(..., method='rk4') on a fixed-dt grid: sample s is the state
    *before* RK4 step s.  Only rows 0/1 (v, w) evolve; extra dims stay fixed.
    """
    ci = pl.program_id(1)

    @pl.when(ci == 0)
    def _init():
        state_ref[...] = x0_ref[...].astype(jnp.float32)

    inv_c = 1.0 / c
    third = 1.0 / 3.0
    half_dt = 0.5 * dt
    dt6 = dt / 6.0
    out_dtype = traj_ref.dtype

    def flow(vv, ww):
        dv = c * (vv - (vv * vv * vv) * third - ww)
        dw = -(vv - a + b * ww) * inv_c
        return dv, dw

    def step(s, carry):
        v, w = carry
        # Record the sample for this time index (dense (st,128) stores).
        traj_ref[s, 0] = v.astype(out_dtype)
        traj_ref[s, 1] = w.astype(out_dtype)
        if dim > 2:
            traj_ref[s, 2:] = state_ref[2:, :, :].astype(out_dtype)
        # Classic RK4 step with incremental k-sum (low vreg pressure).
        k1v, k1w = flow(v, w)
        accv, accw = k1v, k1w
        k2v, k2w = flow(v + half_dt * k1v, w + half_dt * k1w)
        accv, accw = accv + 2.0 * k2v, accw + 2.0 * k2w
        k3v, k3w = flow(v + half_dt * k2v, w + half_dt * k2w)
        accv, accw = accv + 2.0 * k3v, accw + 2.0 * k3w
        k4v, k4w = flow(v + dt * k3v, w + dt * k3w)
        return (v + dt6 * (accv + k4v), w + dt6 * (accw + k4w))

    v, w = jax.lax.fori_loop(0, tchunk, step,
                             (state_ref[0], state_ref[1]), unroll=True)
    state_ref[0] = v
    state_ref[1] = w


# ----------------------------------------------------------------------------
# Packing / tiling helpers
# ----------------------------------------------------------------------------

def _pack_batch(x):
    """(B, dim) -> ((dim, Bp//128, 128), Bp) with batch padded to 128 multiple."""
    B, dim = x.shape
    Bp = -(-B // 128) * 128
    if Bp != B:
        x = jnp.pad(x, ((0, Bp - B), (0, 0)))
    return x.T.reshape(dim, Bp // 128, 128), Bp


def _unpack_batch(xp, B):
    """(dim, Bsub, 128) -> (B, dim)."""
    dim = xp.shape[0]
    return xp.reshape(dim, -1).T[:B]


def _pick_sub_tile(bsub, cap):
    """Sublane tile (second-minor dim) for a packed (dim, bsub, 128) array.

    Multiple of 8 when possible (dense (8,128) tiles); prefers >= 2 tiles so the
    'parallel' batch axis can shard across v7x's two TensorCores; otherwise a
    single full-extent block (always legal).
    """
    if bsub % 8 != 0:
        return bsub
    upper = bsub if bsub < 16 else bsub // 2
    upper = min(cap, upper)
    upper -= upper % 8
    upper = max(upper, 8)
    for t in range(upper, 7, -8):
        if bsub % t == 0:
            return t
    return bsub


def _pick_time_chunk(T, cap=32, min_chunk=8):
    """RK4 steps per grid iteration; prefer an exact divisor of T, else pad."""
    if T <= cap:
        return T
    for c in range(cap, min_chunk - 1, -1):
        if T % c == 0:
            return c
    return 16  # no good divisor: pad T up to a multiple of 16


# ----------------------------------------------------------------------------
# Wrapper module
# ----------------------------------------------------------------------------

class FitzHughNagumoPallas:
    """JAX/Pallas port of the PyTorch FitzHughNagumo module."""

    def __init__(self, a=0.7, b=0.8, c=0.8, dim=2, dt=0.05,
                 time_span=(0.0, 5.0), noise_std=0.0):
        assert dim >= 2, "FitzHugh-Nagumo needs at least (v, w)"
        self.a = float(a)
        self.b = float(b)
        self.c = float(c)
        self.dim = dim
        self.dt = float(dt)
        self.time_span = time_span
        self.noise_std = noise_std  # TODO(synk): SDE (noise_std > 0) path not implemented.

    # -- flow field ----------------------------------------------------------
    def forward(self, t, x):
        """x: (batch, dim) or (dim,) -> dx/dt of shape (batch, dim)."""
        del t  # autonomous system
        x = jnp.asarray(x)
        if x.ndim == 1:
            x = x[None, :]
        B, dim = x.shape
        assert dim == self.dim

        # NOTE: layout fix (batch onto sublanes+lanes) happens once here; callers
        # that can hold the packed (dim, B/128, 128) layout end-to-end should do
        # so to avoid the extra HBM transpose passes around this tiny kernel.
        xp, Bp = _pack_batch(x)
        bsub = Bp // 128
        st = _pick_sub_tile(bsub, cap=64)

        kernel = functools.partial(_fhn_flow_kernel,
                                   a=self.a, b=self.b, c=self.c, dim=dim)

        outp = pl.pallas_call(
            kernel,
            out_shape=jax.ShapeDtypeStruct((dim, bsub, 128), x.dtype),
            grid_spec=pltpu.PrefetchScalarGridSpec(
                num_scalar_prefetch=0,
                grid=(bsub // st,),
                in_specs=[pl.BlockSpec((dim, st, 128), lambda i: (0, i, 0))],
                out_specs=pl.BlockSpec((dim, st, 128), lambda i: (0, i, 0)),
            ),
            compiler_params=pltpu.CompilerParams(
                dimension_semantics=("parallel",),
                vmem_limit_bytes=_VMEM_LIMIT),
        )(xp)
        return _unpack_batch(outp, B)

    # -- fused RK4 rollout ---------------------------------------------------
    def compute_trajectory(self, initial_conditions, dt=None, time_span=None,
                           return_packed=False):
        """Deterministic RK4 rollout.

        Returns (B, T, dim) trajectories (PyTorch convention).  Pass
        `return_packed=True` to get the lane-dense (T, dim, B/128, 128) layout
        straight from the kernel and skip the final HBM transpose pass.
        """
        x0 = jnp.asarray(initial_conditions)
        if x0.ndim == 1:
            x0 = x0[None, :]
        if time_span is None:
            time_span = self.time_span
        if dt is None:
            dt = self.dt
        dt = float(dt)

        t_values = np.arange(time_span[0], time_span[1], dt)
        T = int(t_values.shape[0])
        B, dim = x0.shape
        assert dim == self.dim

        x0p, Bp = _pack_batch(x0)
        bsub = Bp // 128
        st = _pick_sub_tile(bsub, cap=32)
        tchunk = _pick_time_chunk(T)
        n_chunks = -(-T // tchunk)
        T_pad = n_chunks * tchunk

        kernel = functools.partial(
            _fhn_rollout_kernel,
            a=self.a, b=self.b, c=self.c, dt=dt, dim=dim, tchunk=tchunk)

        traj = pl.pallas_call(
            kernel,
            out_shape=jax.ShapeDtypeStruct((T_pad, dim, bsub, 128), x0.dtype),
            grid_spec=pltpu.PrefetchScalarGridSpec(
                num_scalar_prefetch=0,
                grid=(bsub // st, n_chunks),           # time innermost -> state carry
                in_specs=[pl.BlockSpec((dim, st, 128),
                                       lambda bi, ci: (0, bi, 0))],
                out_specs=pl.BlockSpec((tchunk, dim, st, 128),
                                       lambda bi, ci: (ci, 0, bi, 0)),
                scratch_shapes=[pltpu.VMEM((dim, st, 128), jnp.float32)],
            ),
            compiler_params=pltpu.CompilerParams(
                dimension_semantics=("parallel", "arbitrary"),
                vmem_limit_bytes=_VMEM_LIMIT),
        )(x0p)

        if return_packed:
            return traj[:T]                            # (T, dim, B/128, 128)

        # One layout pass to the PyTorch (B, T, dim) convention.
        traj = traj[:T].reshape(T, dim, Bp)
        return jnp.transpose(traj, (2, 0, 1))[:B]


# ----------------------------------------------------------------------------
# Pure-JAX references (mirror the PyTorch module)
# ----------------------------------------------------------------------------

def _reference_forward(x, a, b, c):
    dxdt = jnp.zeros_like(x)
    v, w = x[:, 0], x[:, 1]
    dxdt = dxdt.at[:, 0].set(c * (v - v ** 3 / 3.0 - w))
    dxdt = dxdt.at[:, 1].set(-(v - a + b * w) / c)
    return dxdt


def _reference_trajectory(x0, a, b, c, dt, num_steps):
    def f(y):
        return _reference_forward(y, a, b, c)

    def step(y, _):
        k1 = f(y)
        k2 = f(y + 0.5 * dt * k1)
        k3 = f(y + 0.5 * dt * k2)
        k4 = f(y + dt * k3)
        y_next = y + (dt / 6.0) * (k1 + 2.0 * k2 + 2.0 * k3 + k4)
        return y_next, y                               # record-then-step

    _, ys = jax.lax.scan(step, x0, None, length=num_steps)
    return jnp.transpose(ys, (1, 0, 2))                # (B, T, dim)


# ----------------------------------------------------------------------------
# Self-test
# ----------------------------------------------------------------------------

if __name__ == "__main__":
    a, b, c = 0.7, 0.8, 0.8
    batch, dim = 8, 2
    dt, time_span = 0.05, (0.0, 1.0)

    module = FitzHughNagumoPallas(a=a, b=b, c=c, dim=dim, dt=dt,
                                  time_span=time_span)

    key = jax.random.PRNGKey(0)
    x = jax.random.normal(key, (batch, dim), dtype=jnp.float32)

    # Flow-field kernel vs reference.
    flow = jax.block_until_ready(module.forward(0.0, x))
    ref_flow = _reference_forward(x, a, b, c)
    assert flow.shape == x.shape and flow.dtype == x.dtype
    assert jnp.allclose(flow, ref_flow, atol=1e-5, rtol=1e-5), "flow mismatch"

    # Fused RK4 rollout kernel vs pure-JAX RK4 reference.
    traj = jax.block_until_ready(module.compute_trajectory(x))
    T = int(np.arange(time_span[0], time_span[1], dt).shape[0])
    assert traj.shape == (batch, T, dim), traj.shape
    ref_traj = _reference_trajectory(x, a, b, c, dt, T)
    assert jnp.allclose(traj, ref_traj, atol=1e-4, rtol=1e-4), "trajectory mismatch"

    print("KERNEL_OK")
</pallas_src>

<mosaic_0001>
module attributes {stable_mosaic.version = 11 : i64} {
  func.func @_fhn_flow_kernel(%arg0: i32, %arg1: memref<2x1x128xf32, #tpu.memory_space<vmem>>, %arg2: memref<2x1x128xf32, #tpu.memory_space<vmem>>) attributes {dimension_semantics = [#tpu.dimension_semantics<parallel>], iteration_bounds = array<i64: 1>, scalar_prefetch = 0 : i64, scratch_operands = 0 : i64, tpu.core_type = #tpu.core_type<tc>, window_params = [{transform_indices = @transform_0, window_bounds = array<i64: 2, 1, 128>}, {transform_indices = @transform_1, window_bounds = array<i64: 2, 1, 128>}]} {
    %c0 = arith.constant 0 : index
    %c0_0 = arith.constant 0 : index
    %c0_1 = arith.constant 0 : index
    %0 = vector.load %arg1[%c0, %c0_0, %c0_1] : memref<2x1x128xf32, #tpu.memory_space<vmem>>, vector<1x1x128xf32>
    %1 = vector.shape_cast %0 : vector<1x1x128xf32> to vector<1x128xf32>
    %c1 = arith.constant 1 : index
    %c0_2 = arith.constant 0 : index
    %c0_3 = arith.constant 0 : index
    %2 = vector.load %arg1[%c1, %c0_2, %c0_3] : memref<2x1x128xf32, #tpu.memory_space<vmem>>, vector<1x1x128xf32>
    %3 = vector.shape_cast %2 : vector<1x1x128xf32> to vector<1x128xf32>
    %4 = arith.mulf %1, %1 : vector<1x128xf32>
    %5 = arith.mulf %4, %1 : vector<1x128xf32>
    %cst = arith.constant 0.333333343 : f32
    %6 = vector.broadcast %cst : f32 to vector<1x128xf32>
    %7 = arith.mulf %5, %6 : vector<1x128xf32>
    %8 = arith.subf %1, %7 : vector<1x128xf32>
    %9 = arith.subf %8, %3 : vector<1x128xf32>
    %cst_4 = arith.constant 8.000000e-01 : f32
    %10 = vector.broadcast %cst_4 : f32 to vector<1x128xf32>
    %11 = arith.mulf %10, %9 : vector<1x128xf32>
    %cst_5 = arith.constant 0.699999988 : f32
    %12 = vector.broadcast %cst_5 : f32 to vector<1x128xf32>
    %13 = arith.subf %1, %12 : vector<1x128xf32>
    %cst_6 = arith.constant 8.000000e-01 : f32
    %14 = vector.broadcast %cst_6 : f32 to vector<1x128xf32>
    %15 = arith.mulf %14, %3 : vector<1x128xf32>
    %16 = arith.addf %13, %15 : vector<1x128xf32>
    %cst_7 = arith.constant 0.000000e+00 : f32
    %17 = vector.broadcast %cst_7 : f32 to vector<1x128xf32>
    %18 = arith.subf %17, %16 : vector<1x128xf32>
    %cst_8 = arith.constant 1.250000e+00 : f32
    %19 = vector.broadcast %cst_8 : f32 to vector<1x128xf32>
    %20 = arith.mulf %18, %19 : vector<1x128xf32>
    %21 = vector.shape_cast %11 : vector<1x128xf32> to vector<1x1x128xf32>
    %22 = vector.shape_cast %20 : vector<1x128xf32> to vector<1x1x128xf32>
    %23 = tpu.concatenate %21, %22 in 0 : vector<1x1x128xf32>, vector<1x1x128xf32> -> vector<2x1x128xf32>
    %c0_9 = arith.constant 0 : index
    %c0_10 = arith.constant 0 : index
    %c0_11 = arith.constant 0 : index
    %24 = vector.load %arg2[%c0_9, %c0_10, %c0_11] : memref<2x1x128xf32, #tpu.memory_space<vmem>>, vector<2x1x128xf32>
    tpu.vector_store %arg2[%c0_9, %c0_10, %c0_11], %23 {strides = array<i32>} : memref<2x1x128xf32, #tpu.memory_space<vmem>>, vector<2x1x128xf32>,
    return
  }
  func.func @transform_0(%arg0: i32) -> (i32, i32, i32) {
    %c0_i32 = arith.constant 0 : i32
    %c0_i32_0 = arith.constant 0 : i32
    %c0_i32_1 = arith.constant 0 : i32
    return %c0_i32, %arg0, %c0_i32_0 : i32, i32, i32
  }
  func.func @transform_1(%arg0: i32) -> (i32, i32, i32) {
    %c0_i32 = arith.constant 0 : i32
    %c0_i32_0 = arith.constant 0 : i32
    %c0_i32_1 = arith.constant 0 : i32
    return %c0_i32, %arg0, %c0_i32_0 : i32, i32, i32
  }
}

</mosaic_0001>

<bundles_post_ra>
// kernel: tpu_custom_call.1
= control target key start
LH: loop header
LB: loop body
LE: loop exit
PB: predicated region body
PF: predicated region fallthrough
CT: control target
= control target key end

     0   :  { %6 = vsyncpa [#allocation3], 0  ;;  %s153_s0 = inlined_call_operand.hbm [shape: f32[2,1,128], index: 0, kind: input, shape index: {}]   ;;  %s154_s1 = inlined_call_operand.hbm [shape: f32[2,1,128], index: 1, kind: output, shape index: {}]  }
   0x1   :  { %7 = vsyncpa [#allocation4], 0  ;;  %s109_s6 = smov [#allocation2]   ;;  %s61_s10 = scalar_lea.hbm %s153_s0, 32 }
   0x2   :  { %s13_s7 = sshll.u32 %s109_s6, 4  ;;  %p62_p0 = scmp.ne.s32.totalorder %s153_s0, %s61_s10  ;;  %s14_s7 = int_to_ptr.vmem [resolvable:$true] %s13_s7 }
   0x3   :  { %p65_p1 = scmp.lt.u32.totalorder %s61_s10, %s153_s0 }
   0x5   :  { %p67_p2 = pnand %p65_p1, %p62_p0 }
   0x7   :  { %70 = shalt.err (!%p67_p2)
}
   0x8   :  { %s71_s15 = scalar_lea.vmem %s14_s7, 32  ;;  %p76_p4 = scmp.lt.s32.totalorder %s14_s7, %s14_s7 }
   0x9   :  { %p72_p3 = scmp.ne.s32.totalorder %s14_s7, %s71_s15  ;;  %p77_p5 = scmp.lt.s32.totalorder %s71_s15, %s71_s15 }
   0xb   :  { %p78_p6 = por %p77_p5, %p76_p4 }
   0xd   :  { %p79_p7 = pnand %p78_p6, %p72_p3 }
   0xf   :  { %82 = shalt.err (!%p79_p7)
}
  0x10   :  { %s110_s16 = smov 16   ;;  %s111_s17 = smov 1  }
  0x11   :  { %19 = dma.hbm_to_vmem [thread:$0]  %s153_s0, 32, %s14_s7, [#allocation3], %s110_s16, %s110_s16, %s111_s17  }
  0x12   :  { %105 = dma.done.wait [#allocation3], 32  }
  0x13   :  { %106 = vsyncadd [#allocation3], 4294967264  ;;  %v23_v0 = vld [vmem:[#allocation2] sm:$0x1]  ;;  %v25_v1 = vld [vmem:[#allocation2 + $0x1] sm:$0x1] }
  0x14   :  { %v26_v2 = vmul.f32 %v23_v0, %v23_v0  ;;  %v33_v3 = vmul.f32 0.8, %v25_v1  ;;  %v56_v4 = vadd.f32 -0.7, %v23_v0  ;;  %s112_s20 = smov [#allocation5]  }
  0x15   :  { %s44_s21 = sshll.u32 %s112_s20, 4  ;;  %s45_s21 = int_to_ptr.vmem [resolvable:$true] %s44_s21 }
  0x16   :  { %v27_v5 = vmul.f32 %v26_v2, %v23_v0  ;;  %v34_v6 = vadd.f32 %v56_v4, %v33_v3  ;;  %s83_s0 = scalar_lea.vmem %s45_s21, 32  ;;  %p88_p9 = scmp.lt.s32.totalorder %s45_s21, %s45_s21 }
  0x17   :  { %p84_p8 = scmp.ne.s32.totalorder %s45_s21, %s83_s0  ;;  %p89_p10 = scmp.lt.s32.totalorder %s83_s0, %s83_s0 }
  0x18   :  { %v28_v7 = vmul.f32 0.33333334, %v27_v5  ;;  %v35_v8 = vsub.f32 0.0, %v34_v6 }
  0x19   :  { %p90_p11 = por %p89_p10, %p88_p9 }
  0x1a   :  { %v29_v9 = vsub.f32 %v23_v0, %v28_v7  ;;  %v36_v10 = vmul.f32 1.25, %v35_v8 }
  0x1b   :  { %p91_p12 = pnand %p90_p11, %p84_p8 }
  0x1c   :  { %v30_v11 = vsub.f32 %v29_v9, %v25_v1  ;;  %38 = vst [vmem:[#allocation5 + $0x1] sm:$0x1] %v36_v10 }
  0x1e   :  { %v31_v12 = vmul.f32 0.8, %v30_v11 }
  0x20   :  { %37 = vst [vmem:[#allocation5] sm:$0x1] %v31_v12 }
  0x21   :  { %94 = shalt.err (!%p91_p12)
}
  0x22   :  { %s95_s24 = scalar_lea.hbm %s154_s1, 32 }
  0x23   :  { %p96_p13 = scmp.ne.s32.totalorder %s154_s1, %s95_s24  ;;  %p99_p0 = scmp.lt.u32.totalorder %s95_s24, %s154_s1 }
  0x25   :  { %p101_p1 = pnand %p99_p0, %p96_p13 }
  0x27   :  { %104 = shalt.err (!%p101_p1)
}
  0x28   :  { %50 = dma.vmem_to_hbm [thread:$0]  %s45_s21, 32, %s154_s1, [#allocation4], %s110_s16, %s110_s16, %s111_s17  }
  0x29   :  { %107 = dma.done.wait [#allocation4], 32  }
  0x2a   :  { %108 = vsyncadd [#allocation4], 4294967264 }
  0x2b   :  { %54 = vsyncpa [#allocation3], 1 }
  0x2c   :  { %55 = vsyncpa [#allocation4], 1 }

</bundles_post_ra>
